<compile_context>
chip_gen: v6e
topology: v6e:2x2x1
jax: 0.10.0
libtpu: 0.0.40
codegen_flags: <defaults>
</compile_context>

<pallas_src>
import jax
import jax.numpy as jnp
from jax.experimental import pallas as pl
from jax.experimental.pallas import tpu as pltpu

_LANE = 128
_SUBLANE = 8


def mlp_kernel(params_ref, x_ref, o_ref):
    # params_ref: (17,) f32 in SMEM
    #   [0:8]   W1 row-major (4, 2)
    #   [8:12]  b1 (4,)
    #   [12:16] W2 row (1, 4) flattened
    #   [16]    b2
    # x_ref: (2, R, 128) VMEM, input dtype  -- batch packed as (sublane, lane)
    # o_ref: (R, 128)    VMEM, output dtype
    x0 = x_ref[0].astype(jnp.float32)          # (R, 128)
    x1 = x_ref[1].astype(jnp.float32)          # (R, 128)

    # Hoist all scalar parameter reads out of the unrolled loop.
    w1 = [params_ref[i] for i in range(8)]       # W1 rows: (w[j,0], w[j,1])
    b1 = [params_ref[8 + i] for i in range(4)]
    w2 = [params_ref[12 + i] for i in range(4)]
    b2 = params_ref[16]

    out = jnp.full_like(x0, b2)                  # start from b2
    for j in range(4):                           # 4 hidden units, pure VPU
        hj = w1[2 * j] * x0 + w1[2 * j + 1] * x1 + b1[j]
        hj = jnp.maximum(hj, 0.0)                # ReLU
        out = out + w2[j] * hj
    o_ref[...] = out.astype(o_ref.dtype)


def _round_up(a, m):
    return (a + m - 1) // m * m


def neural_network_forward(x, w1, b1, w2, b2, *, block_b=512 * 1024):
    """Forward pass matching the PyTorch module.

    x:  (B, 2)
    w1: (4, 2), b1: (4,)   -- nn.Linear(2, 4) params (PyTorch convention)
    w2: (1, 4), b2: (1,)   -- nn.Linear(4, 1) params
    returns: (B, 1), dtype of x
    """
    B = x.shape[0]
    dtype = x.dtype

    # Pack all 17 parameters into one flat f32 vector for SMEM.
    params = jnp.concatenate([
        w1.reshape(-1).astype(jnp.float32),   # (8,)
        b1.reshape(-1).astype(jnp.float32),   # (4,)
        w2.reshape(-1).astype(jnp.float32),   # (4,)
        b2.reshape(-1).astype(jnp.float32),   # (1,)
    ])

    # Batch packed into dense (row-group, lane) slabs of 128 lanes each.
    r_total = pl.cdiv(B, _LANE)                      # 128-lane row groups needed
    r_cap = max(block_b // _LANE, _SUBLANE)          # cap in row groups
    if r_total <= _SUBLANE:
        r_block = r_total                            # single full-extent block
    else:
        # Aim for >= ~4 grid steps when the batch is large (megacore / overlap),
        # while keeping blocks a multiple of 8 sublanes and under the cap.
        r_block = min(r_cap, max(_SUBLANE,
                                 _round_up(pl.cdiv(r_total, 4), _SUBLANE)))
    r_padded = _round_up(r_total, r_block)
    bp = r_padded * _LANE
    grid = r_padded // r_block

    # Single fused transpose+pad in native dtype; the reshape to
    # (2, r_padded, 128) is a free contiguous view of (2, bp).
    x_t = jnp.pad(x.T, ((0, 0), (0, bp - B))).reshape(2, r_padded, _LANE)

    out_slab = pl.pallas_call(
        mlp_kernel,
        out_shape=jax.ShapeDtypeStruct((r_padded, _LANE), dtype),
        grid=(grid,),
        in_specs=[
            pl.BlockSpec(memory_space=pltpu.MemorySpace.SMEM),       # params
            pl.BlockSpec((2, r_block, _LANE), lambda i: (0, i, 0)),  # x slab
        ],
        out_specs=pl.BlockSpec((r_block, _LANE), lambda i: (i, 0)),
        compiler_params=pltpu.CompilerParams(
            dimension_semantics=("parallel",),
            vmem_limit_bytes=48 * 1024 * 1024,
        ),
    )(params, x_t)

    # Flatten back to (B, 1) without a transpose.
    return out_slab.reshape(-1)[:B].reshape(B, 1)


def _torch_like_linear_init(key, out_features, in_features):
    """Deterministic init mimicking nn.Linear default (uniform +/- 1/sqrt(fan_in))."""
    kw, kb = jax.random.split(key)
    bound = 1.0 / jnp.sqrt(jnp.float32(in_features))
    w = jax.random.uniform(kw, (out_features, in_features),
                           minval=-bound, maxval=bound, dtype=jnp.float32)
    b = jax.random.uniform(kb, (out_features,),
                           minval=-bound, maxval=bound, dtype=jnp.float32)
    return w, b


def _reference(x, w1, b1, w2, b2):
    return jnp.maximum(x @ w1.T + b1, 0.0) @ w2.T + b2


if __name__ == "__main__":
    key = jax.random.PRNGKey(0)
    k_x, k_x2, k_l1, k_l2 = jax.random.split(key, 4)

    # Deterministic parameters with the shapes from __init__.
    w1, b1 = _torch_like_linear_init(k_l1, 4, 2)   # Linear(2, 4)
    w2, b2 = _torch_like_linear_init(k_l2, 1, 4)   # Linear(4, 1)

    # Small deterministic example input: batch=8, features=2 (single block).
    x = jax.random.normal(k_x, (8, 2), dtype=jnp.float32)
    out = jax.block_until_ready(neural_network_forward(x, w1, b1, w2, b2))
    ref = _reference(x, w1, b1, w2, b2)
    assert out.shape == (8, 1)
    assert jnp.allclose(out, ref, atol=1e-5, rtol=1e-5)

    # Second check exercising the multi-step grid + lane padding path.
    x2 = jax.random.normal(k_x2, (2000, 2), dtype=jnp.float32)
    out2 = jax.block_until_ready(neural_network_forward(x2, w1, b1, w2, b2))
    ref2 = _reference(x2, w1, b1, w2, b2)
    assert out2.shape == (2000, 1)
    assert jnp.allclose(out2, ref2, atol=1e-5, rtol=1e-5)

    print("KERNEL_OK")
</pallas_src>

<mosaic_0001>
module attributes {stable_mosaic.version = 11 : i64} {
  func.func @mlp_kernel(%arg0: i32, %arg1: memref<17xf32, #tpu.memory_space<smem>>, %arg2: memref<2x1x128xf32, #tpu.memory_space<vmem>>, %arg3: memref<1x128xf32, #tpu.memory_space<vmem>>) attributes {dimension_semantics = [#tpu.dimension_semantics<parallel>], iteration_bounds = array<i64: 1>, scalar_prefetch = 0 : i64, scratch_operands = 0 : i64, tpu.core_type = #tpu.core_type<tc>, window_params = [{transform_indices = @transform_0, window_bounds = array<i64: 17>}, {transform_indices = @transform_1, window_bounds = array<i64: 2, 1, 128>}, {transform_indices = @transform_2, window_bounds = array<i64: 1, 128>}]} {
    %c0 = arith.constant 0 : index
    %c0_0 = arith.constant 0 : index
    %c0_1 = arith.constant 0 : index
    %0 = vector.load %arg2[%c0, %c0_0, %c0_1] : memref<2x1x128xf32, #tpu.memory_space<vmem>>, vector<1x1x128xf32>
    %1 = vector.shape_cast %0 : vector<1x1x128xf32> to vector<1x128xf32>
    %c1 = arith.constant 1 : index
    %c0_2 = arith.constant 0 : index
    %c0_3 = arith.constant 0 : index
    %2 = vector.load %arg2[%c1, %c0_2, %c0_3] : memref<2x1x128xf32, #tpu.memory_space<vmem>>, vector<1x1x128xf32>
    %3 = vector.shape_cast %2 : vector<1x1x128xf32> to vector<1x128xf32>
    %c0_4 = arith.constant 0 : index
    %4 = memref.load %arg1[%c0_4] : memref<17xf32, #tpu.memory_space<smem>>
    %c1_5 = arith.constant 1 : index
    %5 = memref.load %arg1[%c1_5] : memref<17xf32, #tpu.memory_space<smem>>
    %c2 = arith.constant 2 : index
    %6 = memref.load %arg1[%c2] : memref<17xf32, #tpu.memory_space<smem>>
    %c3 = arith.constant 3 : index
    %7 = memref.load %arg1[%c3] : memref<17xf32, #tpu.memory_space<smem>>
    %c4 = arith.constant 4 : index
    %8 = memref.load %arg1[%c4] : memref<17xf32, #tpu.memory_space<smem>>
    %c5 = arith.constant 5 : index
    %9 = memref.load %arg1[%c5] : memref<17xf32, #tpu.memory_space<smem>>
    %c6 = arith.constant 6 : index
    %10 = memref.load %arg1[%c6] : memref<17xf32, #tpu.memory_space<smem>>
    %c7 = arith.constant 7 : index
    %11 = memref.load %arg1[%c7] : memref<17xf32, #tpu.memory_space<smem>>
    %c8 = arith.constant 8 : index
    %12 = memref.load %arg1[%c8] : memref<17xf32, #tpu.memory_space<smem>>
    %c9 = arith.constant 9 : index
    %13 = memref.load %arg1[%c9] : memref<17xf32, #tpu.memory_space<smem>>
    %c10 = arith.constant 10 : index
    %14 = memref.load %arg1[%c10] : memref<17xf32, #tpu.memory_space<smem>>
    %c11 = arith.constant 11 : index
    %15 = memref.load %arg1[%c11] : memref<17xf32, #tpu.memory_space<smem>>
    %c12 = arith.constant 12 : index
    %16 = memref.load %arg1[%c12] : memref<17xf32, #tpu.memory_space<smem>>
    %c13 = arith.constant 13 : index
    %17 = memref.load %arg1[%c13] : memref<17xf32, #tpu.memory_space<smem>>
    %c14 = arith.constant 14 : index
    %18 = memref.load %arg1[%c14] : memref<17xf32, #tpu.memory_space<smem>>
    %c15 = arith.constant 15 : index
    %19 = memref.load %arg1[%c15] : memref<17xf32, #tpu.memory_space<smem>>
    %c16 = arith.constant 16 : index
    %20 = memref.load %arg1[%c16] : memref<17xf32, #tpu.memory_space<smem>>
    %21 = vector.broadcast %20 : f32 to vector<1x128xf32>
    %22 = vector.broadcast %4 : f32 to vector<1x128xf32>
    %23 = arith.mulf %22, %1 : vector<1x128xf32>
    %24 = vector.broadcast %5 : f32 to vector<1x128xf32>
    %25 = arith.mulf %24, %3 : vector<1x128xf32>
    %26 = arith.addf %23, %25 : vector<1x128xf32>
    %27 = vector.broadcast %12 : f32 to vector<1x128xf32>
    %28 = arith.addf %26, %27 : vector<1x128xf32>
    %cst = arith.constant 0.000000e+00 : f32
    %29 = vector.broadcast %cst : f32 to vector<1x128xf32>
    %30 = arith.maximumf %28, %29 : vector<1x128xf32>
    %31 = vector.broadcast %16 : f32 to vector<1x128xf32>
    %32 = arith.mulf %31, %30 : vector<1x128xf32>
    %33 = arith.addf %21, %32 : vector<1x128xf32>
    %34 = vector.broadcast %6 : f32 to vector<1x128xf32>
    %35 = arith.mulf %34, %1 : vector<1x128xf32>
    %36 = vector.broadcast %7 : f32 to vector<1x128xf32>
    %37 = arith.mulf %36, %3 : vector<1x128xf32>
    %38 = arith.addf %35, %37 : vector<1x128xf32>
    %39 = vector.broadcast %13 : f32 to vector<1x128xf32>
    %40 = arith.addf %38, %39 : vector<1x128xf32>
    %cst_6 = arith.constant 0.000000e+00 : f32
    %41 = vector.broadcast %cst_6 : f32 to vector<1x128xf32>
    %42 = arith.maximumf %40, %41 : vector<1x128xf32>
    %43 = vector.broadcast %17 : f32 to vector<1x128xf32>
    %44 = arith.mulf %43, %42 : vector<1x128xf32>
    %45 = arith.addf %33, %44 : vector<1x128xf32>
    %46 = vector.broadcast %8 : f32 to vector<1x128xf32>
    %47 = arith.mulf %46, %1 : vector<1x128xf32>
    %48 = vector.broadcast %9 : f32 to vector<1x128xf32>
    %49 = arith.mulf %48, %3 : vector<1x128xf32>
    %50 = arith.addf %47, %49 : vector<1x128xf32>
    %51 = vector.broadcast %14 : f32 to vector<1x128xf32>
    %52 = arith.addf %50, %51 : vector<1x128xf32>
    %cst_7 = arith.constant 0.000000e+00 : f32
    %53 = vector.broadcast %cst_7 : f32 to vector<1x128xf32>
    %54 = arith.maximumf %52, %53 : vector<1x128xf32>
    %55 = vector.broadcast %18 : f32 to vector<1x128xf32>
    %56 = arith.mulf %55, %54 : vector<1x128xf32>
    %57 = arith.addf %45, %56 : vector<1x128xf32>
    %58 = vector.broadcast %10 : f32 to vector<1x128xf32>
    %59 = arith.mulf %58, %1 : vector<1x128xf32>
    %60 = vector.broadcast %11 : f32 to vector<1x128xf32>
    %61 = arith.mulf %60, %3 : vector<1x128xf32>
    %62 = arith.addf %59, %61 : vector<1x128xf32>
    %63 = vector.broadcast %15 : f32 to vector<1x128xf32>
    %64 = arith.addf %62, %63 : vector<1x128xf32>
    %cst_8 = arith.constant 0.000000e+00 : f32
    %65 = vector.broadcast %cst_8 : f32 to vector<1x128xf32>
    %66 = arith.maximumf %64, %65 : vector<1x128xf32>
    %67 = vector.broadcast %19 : f32 to vector<1x128xf32>
    %68 = arith.mulf %67, %66 : vector<1x128xf32>
    %69 = arith.addf %57, %68 : vector<1x128xf32>
    %c0_9 = arith.constant 0 : index
    %c0_10 = arith.constant 0 : index
    %70 = vector.load %arg3[%c0_9, %c0_10] : memref<1x128xf32, #tpu.memory_space<vmem>>, vector<1x128xf32>
    tpu.vector_store %arg3[%c0_9, %c0_10], %69 {strides = array<i32>} : memref<1x128xf32, #tpu.memory_space<vmem>>, vector<1x128xf32>,
    return
  }
  func.func @transform_0(%arg0: i32) -> i32 {
    %c0_i32 = arith.constant 0 : i32
    %c0_i32_0 = arith.constant 0 : i32
    return %c0_i32 : i32
  }
  func.func @transform_1(%arg0: i32) -> (i32, i32, i32) {
    %c0_i32 = arith.constant 0 : i32
    %c0_i32_0 = arith.constant 0 : i32
    %c0_i32_1 = arith.constant 0 : i32
    return %c0_i32, %arg0, %c0_i32_0 : i32, i32, i32
  }
  func.func @transform_2(%arg0: i32) -> (i32, i32) {
    %c0_i32 = arith.constant 0 : i32
    %c0_i32_0 = arith.constant 0 : i32
    return %arg0, %c0_i32 : i32, i32
  }
}

</mosaic_0001>

<bundles_post_ra>
// kernel: tpu_custom_call.1
= control target key start
LH: loop header
LB: loop body
LE: loop exit
PB: predicated region body
PF: predicated region fallthrough
CT: control target
= control target key end

     0   :  { %7 = vsyncpa [#allocation5], 0  ;;  %s223_s0 = inlined_call_operand.hbm [shape: f32[17], index: 0, kind: input, shape index: {}]   ;;  %s224_s1 = inlined_call_operand.hbm [shape: f32[2,1,128], index: 1, kind: input, shape index: {}]   ;;  %s225_s2 = inlined_call_operand.hbm [shape: f32[1,128], index: 2, kind: output, shape index: {}]  }
   0x1   :  { %8 = vsyncpa [#allocation3], 0 }
   0x2   :  { %9 = vsyncpa [#allocation4], 0  ;;  %s194_s9 = smov [#allocation2]   ;;  %s195_s12 = smov [#allocation6]  }
   0x3   :  { %17 = dma.hbm_to_smem %s223_s0, 16, %s194_s9, [#allocation5]  }
   0x4   :  { %s23_s13 = sshll.u32 %s195_s12, 4  ;;  %s24_s13 = int_to_ptr.vmem [resolvable:$true] %s23_s13 }
   0x5   :  { %s156_s14 = scalar_lea.vmem %s24_s13, 32  ;;  %p161_p1 = scmp.lt.s32.totalorder %s24_s13, %s24_s13 }
   0x6   :  { %p157_p0 = scmp.ne.s32.totalorder %s24_s13, %s156_s14  ;;  %p162_p2 = scmp.lt.s32.totalorder %s156_s14, %s156_s14 }
   0x8   :  { %p163_p3 = por %p162_p2, %p161_p1 }
   0xa   :  { %p164_p4 = pnand %p163_p3, %p157_p0 }
   0xc   :  { %167 = shalt.err (!%p164_p4)
}
   0xd   :  { %s196_s15 = smov 16   ;;  %s197_s16 = smov 1  }
   0xe   :  { %29 = dma.hbm_to_vmem [thread:$0]  %s224_s1, 32, %s24_s13, [#allocation3], %s196_s15, %s196_s15, %s197_s16  }
   0xf   :  { %188 = dma.done.wait [#allocation5], 16  }
  0x10   :  { %189 = vsyncadd [#allocation5], 4294967280 }
  0x11   :  { %190 = dma.done.wait [#allocation3], 32  }
  0x12   :  { %191 = vsyncadd [#allocation3], 4294967264 }
  0x13   :  { %36 = sfence }
  0x14   :  { %s40_s0 = sld [smem:[#allocation2]]  ;;  %v37_v0 = vld [vmem:[#allocation6] sm:$0x1]  ;;  %v39_v1 = vld [vmem:[#allocation6 + $0x1] sm:$0x1]  ;;  %s198_s6 = smov [#allocation7]  }
  0x15   :  { %s119_s19 = sld [smem:[#allocation2 + $0x1]]  ;;  %s109_s7 = sshll.u32 %s198_s6, 4  ;;  %s110_s7 = int_to_ptr.vmem [resolvable:$true] %s109_s7 }
  0x16   :  { %s120_s20 = sld [smem:[#allocation2 + $0x2]]  ;;  %s168_s8 = scalar_lea.vmem %s110_s7, 16 }
  0x17   :  { %s121_s21 = sld [smem:[#allocation2 + $0x3]]  ;;  %p169_p5 = scmp.ne.s32.totalorder %s110_s7, %s168_s8 }
  0x18   :  { %s122_s22 = sld [smem:[#allocation2 + $0x4]]  ;;  %s172_s9 = scalar_lea.vmem %s110_s7, 32 }
  0x19   :  { %s123_s23 = sld [smem:[#allocation2 + $0x5]]  ;;  %p173_p6 = scmp.lt.s32.totalorder %s110_s7, %s110_s7 }
  0x1a   :  { %s124_s24 = sld [smem:[#allocation2 + $0x6]]  ;;  %v58_v2 = vstv %s40_s0  ;;  %p174_p7 = scmp.lt.s32.totalorder %s172_s9, %s168_s8 }
  0x1b   :  { %s125_s25 = sld [smem:[#allocation2 + $0x7]]  ;;  %v59_v3 = vmul.f32 %v58_v2, %v37_v0  ;;  %v60_v4 = vstv %s119_s19 }
  0x1c   :  { %s126_s26 = sld [smem:[#allocation2 + $0x8]]  ;;  %v61_v5 = vmul.f32 %v60_v4, %v39_v1  ;;  %v69_v6 = vstv %s120_s20  ;;  %p175_p8 = por %p174_p7, %p173_p6 }
  0x1d   :  { %s127_s1 = sld [smem:[#allocation2 + $0x9]]  ;;  %v70_v7 = vmul.f32 %v69_v6, %v37_v0  ;;  %v71_v8 = vstv %s121_s21 }
  0x1e   :  { %s128_s27 = sld [smem:[#allocation2 + $0xa]]  ;;  %v72_v9 = vmul.f32 %v71_v8, %v39_v1  ;;  %v80_v10 = vstv %s122_s22  ;;  %v62_v11 = vadd.f32 %v61_v5, %v59_v3  ;;  %p176_p9 = pnand %p175_p8, %p169_p5 }
  0x1f   :  { %s129_s28 = sld [smem:[#allocation2 + $0xb]]  ;;  %v81_v12 = vmul.f32 %v80_v10, %v37_v0  ;;  %v82_v13 = vstv %s123_s23 }
  0x20   :  { %s130_s29 = sld [smem:[#allocation2 + $0xc]]  ;;  %v73_v14 = vadd.f32 %v72_v9, %v70_v7  ;;  %v83_v15 = vmul.f32 %v82_v13, %v39_v1  ;;  %v91_v16 = vstv %s124_s24 }
  0x21   :  { %s131_s30 = sld [smem:[#allocation2 + $0xd]]  ;;  %v92_v17 = vmul.f32 %v91_v16, %v37_v0  ;;  %v93_v18 = vstv %s125_s25 }
  0x22   :  { %s132_s3 = sld [smem:[#allocation2 + $0xe]]  ;;  %v63_v19 = vstv %s126_s26  ;;  %v84_v20 = vadd.f32 %v83_v15, %v81_v12  ;;  %v94_v21 = vmul.f32 %v93_v18, %v39_v1 }
  0x23   :  { %s133_s4 = sld [smem:[#allocation2 + $0xf]]  ;;  %v64_v22 = vadd.f32 %v63_v19, %v62_v11  ;;  %v74_v23 = vstv %s127_s1 }
  0x24   :  { %s134_s5 = sld [smem:[#allocation2 + $0x10]]  ;;  %v75_v24 = vadd.f32 %v74_v23, %v73_v14  ;;  %v85_v25 = vstv %s128_s27  ;;  %v95_v26 = vadd.f32 %v94_v21, %v92_v17 }
  0x25   :  { %v65_v27 = vmax.f32 %v64_v22, 0.0  ;;  %v86_v28 = vadd.f32 %v85_v25, %v84_v20  ;;  %v96_v29 = vstv %s129_s28 }
  0x26   :  { %v66_v30 = vstv %s130_s29  ;;  %v76_v31 = vmax.f32 %v75_v24, 0.0  ;;  %v97_v32 = vadd.f32 %v96_v29, %v95_v26 }
  0x27   :  { %v67_v33 = vmul.f32 %v66_v30, %v65_v27  ;;  %v77_v34 = vstv %s131_s30  ;;  %v87_v35 = vmax.f32 %v86_v28, 0.0 }
  0x28   :  { %v88_v36 = vstv %s132_s3  ;;  %v78_v37 = vmul.f32 %v77_v34, %v76_v31  ;;  %v98_v38 = vmax.f32 %v97_v32, 0.0 }
  0x29   :  { %v99_v40 = vstv %s133_s4  ;;  %v89_v42 = vmul.f32 %v88_v36, %v87_v35 }
  0x2a   :  { %v57_v39 = vstv %s134_s5  ;;  %v100_v44 = vmul.f32 %v99_v40, %v98_v38 }
  0x2b   :  { %v68_v41 = vadd.f32 %v67_v33, %v57_v39 }
  0x2d   :  { %v79_v43 = vadd.f32 %v78_v37, %v68_v41 }
  0x2f   :  { %v90_v45 = vadd.f32 %v89_v42, %v79_v43 }
  0x31   :  { %v101_v46 = vadd.f32 %v100_v44, %v90_v45 }
  0x33   :  { %102 = vst [vmem:[#allocation7] sm:$0x1] %v101_v46 }
  0x34   :  { %179 = shalt.err (!%p176_p9)
}
  0x35   :  { %112 = dma.vmem_to_hbm [thread:$0]  %s110_s7, 16, %s225_s2, [#allocation4]  }
  0x36   :  { %192 = dma.done.wait [#allocation4], 16  }
  0x37   :  { %193 = vsyncadd [#allocation4], 4294967280 }
  0x38   :  { %116 = vsyncpa [#allocation3], 1 }
  0x39   :  { %117 = vsyncpa [#allocation4], 1 }
  0x3a   :  { %118 = vsyncpa [#allocation5], 1 }

</bundles_post_ra>
